<compile_context>
chip_gen: v5e
topology: v5e:2x2
jax: 0.10.0
libtpu: 0.0.40
codegen_flags: <defaults>
</compile_context>

<pallas_src>
import jax
import jax.numpy as jnp
from jax.experimental import pallas as pl
from jax.experimental.pallas import tpu as pltpu


def _round_up(n, m):
    return ((n + m - 1) // m) * m


def _critic_kernel(x_ref, w1_ref, b1_ref, w2_ref, b2_ref, w3_ref, b3_ref, o_ref):
    # In-register cast (no wrapper HBM pass).  Cast *before* the transpose so
    # the bf16 path moves packed 16-bit data through the XLU; f32 path: no-op.
    # NOTE: for very wide inputs (in_dim >> 128) transposing h1 instead of the
    # x tile would move fewer elements; typical Critic state dims are small.
    xt = x_ref[...].astype(w1_ref.dtype).T                       # (IN, TB) batch-on-lanes

    # ---- Layer 1: (128, IN) @ (IN, TB) -> (128, TB), f32 accumulate on the MXU.
    h1 = jnp.dot(w1_ref[...], xt, preferred_element_type=jnp.float32)
    h1 = jnp.maximum(h1 + b1_ref[...], 0.0)                      # f32 bias + ReLU (VPU)

    # ---- Layer 2: (128, 128) @ (128, TB) -> (128, TB) on the MXU (64->128 zero-pad).
    h2 = jnp.dot(w2_ref[...], h1.astype(w2_ref.dtype),
                 preferred_element_type=jnp.float32)
    h2 = jnp.maximum(h2 + b2_ref[...], 0.0)                      # f32 bias + ReLU (VPU)

    # ---- Layer 3 (N=1): keep it on the (otherwise idle) MXU, not VPU+XLU reduce.
    out = jnp.dot(w3_ref[...], h2, preferred_element_type=jnp.float32) + b3_ref[...]
    o_ref[...] = out.astype(o_ref.dtype)                         # lane-dense (1, TB) store


def _choose_batch_tile(batch, in_dim, x_itemsize,
                       vmem_budget_bytes=32 * 1024 * 1024, max_tile=8192):
    """Batch-tile rows from a conservative VMEM budget (multiple of 128)."""
    # Per-row VMEM estimate:
    #   2x double-buffered x tile          : 2 * in_dim * x_itemsize
    #   transposed x tile                  : in_dim * 4
    #   ~4 live (128, TB) f32 slabs        : 4 * 128 * 4
    #   2x double-buffered (1, TB) f32 out : 2 * 4
    per_row = 2 * in_dim * x_itemsize + in_dim * 4 + 4 * 128 * 4 + 8
    tb = max((vmem_budget_bytes // per_row) // 128 * 128, 128)
    tb = min(tb, max_tile)
    if batch <= tb:
        return batch            # one exact block: no padding, no partial tile
    # keep at least two grid steps so v7x's two TensorCores both get work
    return max(min(tb, _round_up(pl.cdiv(batch, 2), 128)), 128)


@jax.jit
def critic_forward(x, params):
    """x: [B, input_dim] -> [B, 1] float32.  params from pack_critic_params()."""
    w1, b1, w2, b2, w3, b3 = params
    B, in_dim = x.shape

    tb = _choose_batch_tile(B, in_dim, x.dtype.itemsize)
    grid = pl.cdiv(B, tb)

    def const_spec(a):
        return pl.BlockSpec(a.shape, lambda i: (0,) * a.ndim)    # VMEM-resident weights

    weight_bytes = sum(int(a.size) * a.dtype.itemsize for a in params)
    cost = pl.CostEstimate(
        flops=2 * B * (in_dim * 128 + 128 * 128 + 128),
        transcendentals=0,
        bytes_accessed=B * in_dim * x.dtype.itemsize + B * 4 + weight_bytes,
    )

    out = pl.pallas_call(
        _critic_kernel,
        out_shape=jax.ShapeDtypeStruct((grid, 1, tb), jnp.float32),
        grid_spec=pltpu.PrefetchScalarGridSpec(
            num_scalar_prefetch=0,
            grid=(grid,),
            in_specs=[
                pl.BlockSpec((tb, in_dim), lambda i: (i, 0)),    # x tile (pipelined)
                const_spec(w1), const_spec(b1),
                const_spec(w2), const_spec(b2),
                const_spec(w3), const_spec(b3),
            ],
            # Lane-dense output: one full (1, TB) row per grid step.
            out_specs=pl.BlockSpec((None, 1, tb), lambda i: (i, 0, 0)),
        ),
        compiler_params=pltpu.CompilerParams(
            dimension_semantics=("parallel",),
            vmem_limit_bytes=48 * 1024 * 1024,   # safe on v5e/v6e and < v7x's 64 MiB
        ),
        cost_estimate=cost,
    )(x, w1, b1, w2, b2, w3, b3)

    # (grid, 1, TB) batch-on-lanes -> [B, 1]; any ragged-tail lanes are dropped.
    return out.reshape(grid * tb)[:B].reshape(B, 1)


def init_critic_params(key, input_dim):
    """Raw PyTorch-style params (uniform(+-1/sqrt(fan_in))), W stored [in, out]."""
    dims = [(input_dim, 128), (128, 64), (64, 1)]
    raw = []
    for fan_in, fan_out in dims:
        key, kw, kb = jax.random.split(key, 3)
        bound = 1.0 / (fan_in ** 0.5)
        w = jax.random.uniform(kw, (fan_in, fan_out), jnp.float32, -bound, bound)
        b = jax.random.uniform(kb, (1, fan_out), jnp.float32, -bound, bound)
        raw += [w, b]
    return tuple(raw)


def pack_critic_params(raw, compute_dtype=jnp.float32):
    """Kernel layout (batch-on-lanes):
       * W stored (out, in); hidden 64 zero-padded to 128 (exact through ReLU,
         and W3's padded columns are zero too);
       * biases stored as (out, 1) f32 columns (broadcast along lanes);
       * MXU operands W1/W2 cast to compute_dtype; everything else stays f32."""
    w1, b1, w2, b2, w3, b3 = raw
    h2 = 128
    w2p = jnp.pad(w2, ((0, 0), (0, h2 - w2.shape[1])))           # [128, 128] (in, out)
    b2p = jnp.pad(b2, ((0, 0), (0, h2 - b2.shape[1])))           # [1, 128]
    w3p = jnp.pad(w3, ((0, h2 - w3.shape[0]), (0, 0)))           # [128, 1]
    return (w1.T.astype(compute_dtype),   # [128, in]   MXU operand
            b1.T,                         # [128, 1]    f32
            w2p.T.astype(compute_dtype),  # [128, 128]  (out, in) MXU operand
            b2p.T,                        # [128, 1]    f32
            w3p.T,                        # [1, 128]    f32 (MXU, M=1, K=128)
            b3)                           # [1, 1]      f32


def critic_reference(x, raw, compute_dtype=jnp.float32):
    """Pure-JAX reference; optionally rounds MXU operands to compute_dtype."""
    w1, b1, w2, b2, w3, b3 = raw
    hi = jax.lax.Precision.HIGHEST
    rd = lambda a: a.astype(compute_dtype).astype(jnp.float32)
    h1 = jnp.maximum(jnp.dot(rd(x), rd(w1), precision=hi) + b1, 0.0)
    h2 = jnp.maximum(jnp.dot(rd(h1), rd(w2), precision=hi) + b2, 0.0)
    return jnp.dot(h2, w3, precision=hi) + b3


if __name__ == "__main__":
    key = jax.random.PRNGKey(0)
    key, kx = jax.random.split(key)

    # NOTE: at B=8 this is pure launch/DMA overhead; the tiling is sized for
    # large batches (VMEM-budget-derived tiles up to 8192 rows, pipelined).
    batch, input_dim = 8, 32
    x = jax.random.normal(kx, (batch, input_dim), jnp.float32)
    raw = init_critic_params(key, input_dim)

    # f32 path: exact check against the PyTorch-equivalent reference.
    params_f32 = pack_critic_params(raw, jnp.float32)
    out_f32 = jax.block_until_ready(critic_forward(x, params_f32))
    ref_f32 = critic_reference(x, raw, jnp.float32)
    assert out_f32.shape == (batch, 1)
    assert jnp.allclose(out_f32, ref_f32, atol=1e-4, rtol=1e-4), "f32 mismatch"

    # bf16 MXU-operand path (v6e/v7x fast path): compare vs bf16-rounded reference.
    params_bf16 = pack_critic_params(raw, jnp.bfloat16)
    out_bf16 = jax.block_until_ready(critic_forward(x, params_bf16))
    ref_bf16 = critic_reference(x, raw, jnp.bfloat16)
    assert jnp.allclose(out_bf16, ref_bf16, atol=2e-2, rtol=2e-2), "bf16 mismatch"

    print("KERNEL_OK")
</pallas_src>

<mosaic_0001>
module attributes {stable_mosaic.version = 11 : i64} {
  func.func @_critic_kernel(%arg0: i32, %arg1: memref<8x32xf32, #tpu.memory_space<vmem>>, %arg2: memref<128x32xf32, #tpu.memory_space<vmem>>, %arg3: memref<128x1xf32, #tpu.memory_space<vmem>>, %arg4: memref<128x128xf32, #tpu.memory_space<vmem>>, %arg5: memref<128x1xf32, #tpu.memory_space<vmem>>, %arg6: memref<1x128xf32, #tpu.memory_space<vmem>>, %arg7: memref<1x1xf32, #tpu.memory_space<vmem>>, %arg8: memref<1x1x8xf32, #tpu.memory_space<vmem>>) attributes {dimension_semantics = [#tpu.dimension_semantics<parallel>], iteration_bounds = array<i64: 1>, scalar_prefetch = 0 : i64, scratch_operands = 0 : i64, tpu.core_type = #tpu.core_type<tc>, window_params = [{transform_indices = @transform_0, window_bounds = array<i64: 8, 32>}, {pipeline_mode = #tpu.pipeline_mode<synchronous>, transform_indices = @transform_1, window_bounds = array<i64: 128, 32>}, {pipeline_mode = #tpu.pipeline_mode<synchronous>, transform_indices = @transform_2, window_bounds = array<i64: 128, 1>}, {pipeline_mode = #tpu.pipeline_mode<synchronous>, transform_indices = @transform_3, window_bounds = array<i64: 128, 128>}, {pipeline_mode = #tpu.pipeline_mode<synchronous>, transform_indices = @transform_4, window_bounds = array<i64: 128, 1>}, {pipeline_mode = #tpu.pipeline_mode<synchronous>, transform_indices = @transform_5, window_bounds = array<i64: 1, 128>}, {pipeline_mode = #tpu.pipeline_mode<synchronous>, transform_indices = @transform_6, window_bounds = array<i64: 1, 1>}, {transform_indices = @transform_7, window_bounds = array<i64: 1, 1, 8>}]} {
    %c0 = arith.constant 0 : index
    %c0_0 = arith.constant 0 : index
    %0 = vector.load %arg1[%c0, %c0_0] : memref<8x32xf32, #tpu.memory_space<vmem>>, vector<8x32xf32>
    %1 = tpu.transpose %0, [1, 0] : vector<8x32xf32> -> vector<32x8xf32>
    %c0_1 = arith.constant 0 : index
    %c0_2 = arith.constant 0 : index
    %2 = vector.load %arg2[%c0_1, %c0_2] : memref<128x32xf32, #tpu.memory_space<vmem>>, vector<128x32xf32>
    %cst = arith.constant dense<0.000000e+00> : vector<128x8xf32>
    %3 = tpu.matmul %2, %1, %cst {dimension_numbers = #tpu.dot_dimension_numbers<[1], [0], [0], [1], [0, 0, 1, 1], [], []>} : vector<128x32xf32>, vector<32x8xf32>, vector<128x8xf32> -> vector<128x8xf32>
    %c0_3 = arith.constant 0 : index
    %c0_4 = arith.constant 0 : index
    %4 = vector.load %arg3[%c0_3, %c0_4] : memref<128x1xf32, #tpu.memory_space<vmem>>, vector<128x1xf32>
    %5 = vector.broadcast %4 : vector<128x1xf32> to vector<128x8xf32>
    %6 = arith.addf %3, %5 : vector<128x8xf32>
    %cst_5 = arith.constant 0.000000e+00 : f32
    %7 = vector.broadcast %cst_5 : f32 to vector<128x8xf32>
    %8 = arith.maximumf %6, %7 : vector<128x8xf32>
    %c0_6 = arith.constant 0 : index
    %c0_7 = arith.constant 0 : index
    %9 = vector.load %arg4[%c0_6, %c0_7] : memref<128x128xf32, #tpu.memory_space<vmem>>, vector<128x128xf32>
    %cst_8 = arith.constant dense<0.000000e+00> : vector<128x8xf32>
    %10 = tpu.matmul %9, %8, %cst_8 {dimension_numbers = #tpu.dot_dimension_numbers<[1], [0], [0], [1], [0, 0, 1, 1], [], []>} : vector<128x128xf32>, vector<128x8xf32>, vector<128x8xf32> -> vector<128x8xf32>
    %c0_9 = arith.constant 0 : index
    %c0_10 = arith.constant 0 : index
    %11 = vector.load %arg5[%c0_9, %c0_10] : memref<128x1xf32, #tpu.memory_space<vmem>>, vector<128x1xf32>
    %12 = vector.broadcast %11 : vector<128x1xf32> to vector<128x8xf32>
    %13 = arith.addf %10, %12 : vector<128x8xf32>
    %cst_11 = arith.constant 0.000000e+00 : f32
    %14 = vector.broadcast %cst_11 : f32 to vector<128x8xf32>
    %15 = arith.maximumf %13, %14 : vector<128x8xf32>
    %c0_12 = arith.constant 0 : index
    %c0_13 = arith.constant 0 : index
    %16 = vector.load %arg6[%c0_12, %c0_13] : memref<1x128xf32, #tpu.memory_space<vmem>>, vector<1x128xf32>
    %cst_14 = arith.constant dense<0.000000e+00> : vector<1x8xf32>
    %17 = tpu.matmul %16, %15, %cst_14 {dimension_numbers = #tpu.dot_dimension_numbers<[1], [0], [0], [1], [0, 0, 1, 1], [], []>} : vector<1x128xf32>, vector<128x8xf32>, vector<1x8xf32> -> vector<1x8xf32>
    %c0_15 = arith.constant 0 : index
    %c0_16 = arith.constant 0 : index
    %18 = vector.load %arg7[%c0_15, %c0_16] : memref<1x1xf32, #tpu.memory_space<vmem>>, vector<1x1xf32>
    %19 = vector.broadcast %18 : vector<1x1xf32> to vector<1x8xf32>
    %20 = arith.addf %17, %19 : vector<1x8xf32>
    %c0_17 = arith.constant 0 : index
    %c0_18 = arith.constant 0 : index
    %c0_19 = arith.constant 0 : index
    %21 = vector.load %arg8[%c0_17, %c0_18, %c0_19] : memref<1x1x8xf32, #tpu.memory_space<vmem>>, vector<1x1x8xf32>
    %22 = vector.shape_cast %21 : vector<1x1x8xf32> to vector<1x8xf32>
    %23 = vector.shape_cast %20 : vector<1x8xf32> to vector<1x1x8xf32>
    tpu.vector_store %arg8[%c0_17, %c0_18, %c0_19], %23 {strides = array<i32>} : memref<1x1x8xf32, #tpu.memory_space<vmem>>, vector<1x1x8xf32>,
    return
  }
  func.func @transform_0(%arg0: i32) -> (i32, i32) {
    %c0_i32 = arith.constant 0 : i32
    %c0_i32_0 = arith.constant 0 : i32
    return %arg0, %c0_i32 : i32, i32
  }
  func.func @transform_1(%arg0: i32) -> (i32, i32) {
    %c0_i32 = arith.constant 0 : i32
    %c0_i32_0 = arith.constant 0 : i32
    %c0_i32_1 = arith.constant 0 : i32
    return %c0_i32, %c0_i32_0 : i32, i32
  }
  func.func @transform_2(%arg0: i32) -> (i32, i32) {
    %c0_i32 = arith.constant 0 : i32
    %c0_i32_0 = arith.constant 0 : i32
    %c0_i32_1 = arith.constant 0 : i32
    return %c0_i32, %c0_i32_0 : i32, i32
  }
  func.func @transform_3(%arg0: i32) -> (i32, i32) {
    %c0_i32 = arith.constant 0 : i32
    %c0_i32_0 = arith.constant 0 : i32
    %c0_i32_1 = arith.constant 0 : i32
    return %c0_i32, %c0_i32_0 : i32, i32
  }
  func.func @transform_4(%arg0: i32) -> (i32, i32) {
    %c0_i32 = arith.constant 0 : i32
    %c0_i32_0 = arith.constant 0 : i32
    %c0_i32_1 = arith.constant 0 : i32
    return %c0_i32, %c0_i32_0 : i32, i32
  }
  func.func @transform_5(%arg0: i32) -> (i32, i32) {
    %c0_i32 = arith.constant 0 : i32
    %c0_i32_0 = arith.constant 0 : i32
    %c0_i32_1 = arith.constant 0 : i32
    return %c0_i32, %c0_i32_0 : i32, i32
  }
  func.func @transform_6(%arg0: i32) -> (i32, i32) {
    %c0_i32 = arith.constant 0 : i32
    %c0_i32_0 = arith.constant 0 : i32
    %c0_i32_1 = arith.constant 0 : i32
    return %c0_i32, %c0_i32_0 : i32, i32
  }
  func.func @transform_7(%arg0: i32) -> (i32, i32, i32) {
    %c0_i32 = arith.constant 0 : i32
    %c0_i32_0 = arith.constant 0 : i32
    %c0_i32_1 = arith.constant 0 : i32
    return %arg0, %c0_i32, %c0_i32_0 : i32, i32, i32
  }
}

</mosaic_0001>

<bundles_post_ra>
// kernel: critic_forward.1
= control target key start
LH: loop header
LB: loop body
LE: loop exit
PB: predicated region body
PF: predicated region fallthrough
CT: control target
= control target key end

     0   :  { %s861_s0 = inlined_call_operand.vmem [shape: f32[8,32], index: 0, kind: input, shape index: {}]   ;;  %s862_s1 = inlined_call_operand.vmem [shape: f32[128,32], index: 1, kind: input, shape index: {}]   ;;  %s863_s2 = inlined_call_operand.vmem [shape: f32[128,1], index: 2, kind: input, shape index: {}]   ;;  %s864_s3 = inlined_call_operand.vmem [shape: f32[128,128], index: 3, kind: input, shape index: {}]   ;;  %s865_s4 = inlined_call_operand.vmem [shape: f32[128,1], index: 4, kind: input, shape index: {}]   ;;  %s866_s5 = inlined_call_operand.vmem [shape: f32[1,128], index: 5, kind: input, shape index: {}]   ;;  %s867_s6 = inlined_call_operand.<no memory space> [shape: f32[1,1], index: 6, kind: input, shape index: {}]   ;;  %s868_s7 = inlined_call_operand.hbm [shape: f32[1,1,8], index: 7, kind: output, shape index: {}]  }
   0x1   :  { %v12_v0 = vstv %s867_s6 }
   0x2   :  { %13 = vst [vmem:[#allocation2] sm:$0x1] %v12_v0 }
   0x3   :  { %v29_v1 = vld [vmem:[%s861_s0] sm:$0xff]  ;;  %vm142_vm0 = vcmask 261120   ;;  %v61_v2 = vld [vmem:[%s863_s2 + $0x78] sm:$0xff]  ;;  %v59_v3 = vld [vmem:[%s863_s2 + $0x68] sm:$0xff]  ;;  %v579_v4 = vmov 0  }
   0x4   :  { %551 = vset.pattern.permute.xlu1 %v579_v4  ;;  %550 = vset.pattern.permute.xlu0 %v579_v4  ;;  %v30_v5 = vld [vmem:[%s862_s1] sm:$0xff]  ;;  %v40_v6 = vld [vmem:[%s862_s1 + $0x50] sm:$0xff]  ;;  %v57_v7 = vld [vmem:[%s863_s2 + $0x58] sm:$0xff] }
   0x5   :  { %514 = vmatpush.xpose.msk.msra.mxu0 %vm142_vm0, %v29_v1  ;;  %531 = vmatpush.xpose.msk.msra.mxu2 %vm142_vm0, %v29_v1  ;;  %v60_v8 = vld [vmem:[%s863_s2 + $0x70] sm:$0xff]  ;;  %v58_v9 = vld [vmem:[%s863_s2 + $0x60] sm:$0xff] }
   0x6   :  { %139 = vperm.xlu0 %550, %v61_v2   ;;  %129 = vperm.xlu1 %551, %v59_v3  }
   0x7   :  { %552 = vset.pattern.permute.xlu2 %v579_v4 }
   0x8   :  { %515 = vmatmul.msk.f32.vlgmr.msra.gmra.mxu0 %vm142_vm0, %v30_v5  ;;  %525 = vmatmul.msk.f32.vlgmr.msra.gmra.mxu2 %vm142_vm0, %v40_v6 }
   0x9   :  { %119 = vperm.xlu2 %552, %v57_v7  }
   0xa   :  { %14 = vsyncpa [#allocation4], 0  ;;  %v31_v10 = vld [vmem:[%s862_s1 + $0x8] sm:$0xff]  ;;  %v41_v11 = vld [vmem:[%s862_s1 + $0x58] sm:$0xff]  ;;  %s580_s25 = smov [#allocation3]   ;;  %s505_s29 = sshll.u32 %s868_s7, 4  ;;  %s506_s29 = int_to_ptr.hbm [resolvable:$true] %s505_s29 }
   0xb   :  { %v56_v12 = vld [vmem:[%s863_s2 + $0x50] sm:$0xff]  ;;  %v55_v13 = vld [vmem:[%s863_s2 + $0x48] sm:$0xff]  ;;  %v54_v14 = vld [vmem:[%s863_s2 + $0x40] sm:$0xff]  ;;  %s503_s26 = sshll.u32 %s580_s25, 4  ;;  %vm496_vm1 = vcmask 57344   ;;  %s504_s26 = int_to_ptr.vmem [resolvable:$true] %s503_s26 }
   0xc   :  { %v32_v15 = vld [vmem:[%s862_s1 + $0x10] sm:$0xff]  ;;  %v42_v16 = vld [vmem:[%s862_s1 + $0x60] sm:$0xff]  ;;  %v53_v17 = vld [vmem:[%s863_s2 + $0x38] sm:$0xff] }
   0xd   :  { %v52_v18 = vld [vmem:[%s863_s2 + $0x30] sm:$0xff]  ;;  %v51_v19 = vld [vmem:[%s863_s2 + $0x28] sm:$0xff]  ;;  %v33_v20 = vld [vmem:[%s862_s1 + $0x18] sm:$0xff] }
   0xe   :  { %134 = vperm.xlu0 %550, %v60_v8   ;;  %124 = vperm.xlu1 %551, %v58_v9   ;;  %v43_v21 = vld [vmem:[%s862_s1 + $0x68] sm:$0xff]  ;;  %v50_v22 = vld [vmem:[%s863_s2 + $0x20] sm:$0xff]  ;;  %v49_v23 = vld [vmem:[%s863_s2 + $0x18] sm:$0xff] }
   0xf   :  { %v48_v24 = vld [vmem:[%s863_s2 + $0x10] sm:$0xff]  ;;  %v34_v25 = vld [vmem:[%s862_s1 + $0x20] sm:$0xff]  ;;  %v47_v27 = vld [vmem:[%s863_s2 + $0x8] sm:$0xff] }
  0x10   :  { %516 = vmatmul.msk.f32.gmra.mxu0 %vm142_vm0, %v31_v10  ;;  %526 = vmatmul.msk.f32.gmra.mxu2 %vm142_vm0, %v41_v11  ;;  %v44_v26 = vld [vmem:[%s862_s1 + $0x70] sm:$0xff]  ;;  %v306_v28 = vld [vmem:[%s865_s4 + $0x78] sm:$0xff]  ;;  %v46_v29 = vld [vmem:[%s863_s2] sm:$0xff] }
  0x11   :  { %114 = vperm.xlu2 %552, %v56_v12   ;;  %v35_v30 = vld [vmem:[%s862_s1 + $0x28] sm:$0xff]  ;;  %v45_v31 = vld [vmem:[%s862_s1 + $0x78] sm:$0xff]  ;;  %v305_v32 = vld [vmem:[%s865_s4 + $0x70] sm:$0xff] }
  0x12   :  { %v303_v33 = vld [vmem:[%s865_s4 + $0x60] sm:$0xff]  ;;  %v304_v34 = vld [vmem:[%s865_s4 + $0x68] sm:$0xff]  ;;  %v36_v35 = vld [vmem:[%s862_s1 + $0x30] sm:$0xff] }
  0x13   :  { %v302_v36 = vld [vmem:[%s865_s4 + $0x58] sm:$0xff]  ;;  %v300_v37 = vld [vmem:[%s865_s4 + $0x48] sm:$0xff]  ;;  %v301_v38 = vld [vmem:[%s865_s4 + $0x50] sm:$0xff] }
  0x14   :  { %v37_v39 = vld [vmem:[%s862_s1 + $0x38] sm:$0xff]  ;;  %v299_v40 = vld [vmem:[%s865_s4 + $0x40] sm:$0xff]  ;;  %v297_v41 = vld [vmem:[%s865_s4 + $0x30] sm:$0xff] }
  0x15   :  { %v298_v42 = vld [vmem:[%s865_s4 + $0x38] sm:$0xff]  ;;  %v38_v43 = vld [vmem:[%s862_s1 + $0x40] sm:$0xff]  ;;  %v296_v44 = vld [vmem:[%s865_s4 + $0x28] sm:$0xff] }
  0x16   :  { %109 = vperm.xlu0 %550, %v55_v13   ;;  %104 = vperm.xlu1 %551, %v54_v14   ;;  %v294_v45 = vld [vmem:[%s865_s4 + $0x18] sm:$0xff]  ;;  %v295_v46 = vld [vmem:[%s865_s4 + $0x20] sm:$0xff]  ;;  %v39_v47 = vld [vmem:[%s862_s1 + $0x48] sm:$0xff] }
  0x17   :  { %v293_v48 = vld [vmem:[%s865_s4 + $0x10] sm:$0xff]  ;;  %v291_v49 = vld [vmem:[%s865_s4] sm:$0xff]  ;;  %v292_v50 = vld [vmem:[%s865_s4 + $0x8] sm:$0xff] }
  0x18   :  { %517 = vmatmul.msk.f32.gmra.mxu0 %vm142_vm0, %v32_v15  ;;  %527 = vmatmul.msk.f32.gmra.mxu2 %vm142_vm0, %v42_v16  ;;  %v469_v51 = vld [vmem:[#allocation2] sm:$0x1] }
  0x19   :  { %99 = vperm.xlu2 %552, %v53_v17  }
  0x1e   :  { %94 = vperm.xlu0 %550, %v52_v18   ;;  %89 = vperm.xlu1 %551, %v51_v19  }
  0x20   :  { %518 = vmatmul.msk.f32.gmra.mxu0 %vm142_vm0, %v33_v20  ;;  %528 = vmatmul.msk.f32.gmra.mxu2 %vm142_vm0, %v43_v21 }
  0x21   :  { %84 = vperm.xlu2 %552, %v50_v22  }
  0x26   :  { %79 = vperm.xlu0 %550, %v49_v23   ;;  %74 = vperm.xlu1 %551, %v48_v24  }
  0x28   :  { %519 = vmatmul.msk.f32.gmra.mxu0 %vm142_vm0, %v34_v25  ;;  %529 = vmatmul.msk.f32.gmra.mxu2 %vm142_vm0, %v44_v26 }
  0x29   :  { %69 = vperm.xlu2 %552, %v47_v27  }
  0x2e   :  { %384 = vperm.xlu1 %551, %v306_v28   ;;  %64 = vperm.xlu0 %550, %v46_v29  }
  0x30   :  { %520 = vmatmul.msk.f32.gmra.mxu0 %vm142_vm0, %v35_v30  ;;  %530 = vmatmul.msk.f32.gmra.mxu2 %vm142_vm0, %v45_v31 }
  0x31   :  { %379 = vperm.xlu2 %552, %v305_v32  }
  0x36   :  { %369 = vperm.xlu1 %551, %v303_v33   ;;  %374 = vperm.xlu0 %550, %v304_v34  }
  0x38   :  { %521 = vmatmul.msk.f32.gmra.mxu0 %vm142_vm0, %v36_v35 }
  0x39   :  { %364 = vperm.xlu2 %552, %v302_v36  }
  0x3e   :  { %354 = vperm.xlu1 %551, %v300_v37   ;;  %359 = vperm.xlu0 %550, %v301_v38  }
  0x40   :  { %522 = vmatmul.msk.f32.gmra.mxu0 %vm142_vm0, %v37_v39 }
  0x41   :  { %349 = vperm.xlu2 %552, %v299_v40  }
  0x46   :  { %339 = vperm.xlu1 %551, %v297_v41   ;;  %344 = vperm.xlu0 %550, %v298_v42  }
  0x48   :  { %523 = vmatmul.msk.f32.gmra.mxu0 %vm142_vm0, %v38_v43 }
  0x49   :  { %334 = vperm.xlu2 %552, %v296_v44  }
  0x4e   :  { %324 = vperm.xlu1 %551, %v294_v45   ;;  %329 = vperm.xlu0 %550, %v295_v46  }
  0x50   :  { %524 = vmatmul.msk.f32.gmra.mxu0 %vm142_vm0, %v39_v47 }
  0x51   :  { %319 = vperm.xlu2 %552, %v293_v48  }
  0x56   :  { %309 = vperm.xlu1 %551, %v291_v49   ;;  %314 = vperm.xlu0 %550, %v292_v50  }
  0x59   :  { %472 = vperm.xlu2 %552, %v469_v51  }
  0x63   :  { %v120_v1 = vpop.permute.xlu2 %119 }
  0x6b   :  { %v115_v14 = vpop.permute.xlu2 %114 }
  0x73   :  { %v100_v22 = vpop.permute.xlu2 %99 }
  0x78   :  { %v140_v61 = vpop.permute.xlu0 %139  ;;  %v130_v63 = vpop.permute.xlu1 %129 }
  0x7b   :  { %v85_v29 = vpop.permute.xlu2 %84 }
  0x80   :  { %v135_v2 = vpop.permute.xlu0 %134  ;;  %v125_v10 = vpop.permute.xlu1 %124 }
  0x83   :  { %v70_v42 = vpop.permute.xlu2 %69 }
  0x85   :  { %v789_v52 = vpop.f32.mrf.mxu0 }
  0x88   :  { %v110_v17 = vpop.permute.xlu0 %109  ;;  %v105_v21 = vpop.permute.xlu1 %104 }
  0x8b   :  { %v241_v53 = vpop.f32.mrf.mxu2 }
  0x8c   :  { %v242_v15 = vadd.f32 %v241_v53, %v115_v14  ;;  %v275_v53 = vld [vmem:[%s864_s3] sm:$0xff] }
  0x8d   :  { %v791_v54 = vpop.f32.mrf.mxu0 }
  0x8e   :  { %v269_v20 = vmax.f32 %v242_v15, 0.0  ;;  %v215_v46 = vadd.f32 %v791_v54, %v70_v42  ;;  %v283_v54 = vld [vmem:[%s864_s3 + $0x40] sm:$0xff]  ;;  %v380_v15 = vpop.permute.xlu2 %379 }
  0x90   :  { %v95_v24 = vpop.permute.xlu0 %94  ;;  %v90_v25 = vpop.permute.xlu1 %89  ;;  %v260_v50 = vmax.f32 %v215_v46, 0.0 }
  0x93   :  { %v244_v55 = vpop.f32.mrf.mxu2 }
  0x94   :  { %v245_v12 = vadd.f32 %v244_v55, %v120_v1  ;;  %v284_v55 = vld [vmem:[%s864_s3 + $0x48] sm:$0xff]  ;;  %v289_v1 = vld [vmem:[%s864_s3 + $0x70] sm:$0xff] }
  0x95   :  { %v793_v56 = vpop.f32.mrf.mxu0 }
  0x96   :  { %v270_v19 = vmax.f32 %v245_v12, 0.0 }
  0x98   :  { %v80_v32 = vpop.permute.xlu0 %79  ;;  %v75_v39 = vpop.permute.xlu1 %74 }
  0x99   :  { %v218_v43 = vadd.f32 %v793_v56, %v75_v39  ;;  %v277_v56 = vld [vmem:[%s864_s3 + $0x10] sm:$0xff] }
  0x9b   :  { %v247_v57 = vpop.f32.mrf.mxu2  ;;  %v261_v48 = vmax.f32 %v218_v43, 0.0 }
  0x9c   :  { %v248_v11 = vadd.f32 %v247_v57, %v125_v10  ;;  %v285_v57 = vld [vmem:[%s864_s3 + $0x50] sm:$0xff] }
  0x9d   :  { %v795_v58 = vpop.f32.mrf.mxu0 }
  0x9e   :  { %v271_v16 = vmax.f32 %v248_v11, 0.0  ;;  %v221_v40 = vadd.f32 %v795_v58, %v80_v32  ;;  %v278_v58 = vld [vmem:[%s864_s3 + $0x18] sm:$0xff] }
  0xa0   :  { %v65_v45 = vpop.permute.xlu0 %64  ;;  %v262_v47 = vmax.f32 %v221_v40, 0.0 }
  0xa1   :  { %v212_v49 = vadd.f32 %v789_v52, %v65_v45  ;;  %v276_v52 = vld [vmem:[%s864_s3 + $0x8] sm:$0xff] }
  0xa3   :  { %v250_v59 = vpop.f32.mrf.mxu2  ;;  %v259_v51 = vmax.f32 %v212_v49, 0.0 }
  0xa4   :  { %v251_v7 = vadd.f32 %v250_v59, %v130_v63  ;;  %v286_v59 = vld [vmem:[%s864_s3 + $0x58] sm:$0xff]  ;;  %v288_v63 = vld [vmem:[%s864_s3 + $0x68] sm:$0xff] }
  0xa5   :  { %v223_v60 = vpop.f32.mrf.mxu0 }
  0xa6   :  { %v272_v13 = vmax.f32 %v251_v7, 0.0  ;;  %v224_v37 = vadd.f32 %v223_v60, %v85_v29  ;;  %v279_v60 = vld [vmem:[%s864_s3 + $0x20] sm:$0xff] }
  0xa8   :  { %v263_v44 = vmax.f32 %v224_v37, 0.0 }
  0xab   :  { %v253_v62 = vpop.f32.mrf.mxu2 }
  0xac   :  { %v254_v3 = vadd.f32 %v253_v62, %v135_v2  ;;  %v280_v62 = vld [vmem:[%s864_s3 + $0x28] sm:$0xff]  ;;  %v282_v2 = vld [vmem:[%s864_s3 + $0x38] sm:$0xff] }
  0xad   :  { %v226_v0 = vpop.f32.mrf.mxu0 }
  0xae   :  { %v273_v8 = vmax.f32 %v254_v3, 0.0  ;;  %v227_v35 = vadd.f32 %v226_v0, %v90_v25  ;;  %v281_v0 = vld [vmem:[%s864_s3 + $0x30] sm:$0xff]  ;;  %v290_v3 = vld [vmem:[%s864_s3 + $0x78] sm:$0xff] }
  0xb0   :  { %v264_v41 = vmax.f32 %v227_v35, 0.0 }
  0xb3   :  { %v256_v4 = vpop.f32.mrf.mxu2 }
  0xb4   :  { %v257_v5 = vadd.f32 %v256_v4, %v140_v61  ;;  %v287_v61 = vld [vmem:[%s864_s3 + $0x60] sm:$0xff] }
  0xb5   :  { %v229_v6 = vpop.f32.mrf.mxu0 }
  0xb6   :  { %v274_v9 = vmax.f32 %v257_v5, 0.0  ;;  %v230_v33 = vadd.f32 %v229_v6, %v95_v24 }
  0xb8   :  { %387 = vmatpush.msra.mxu1 %v274_v9  ;;  %532 = vmatpush.msra.mxu3 %v274_v9  ;;  %v265_v38 = vmax.f32 %v230_v33, 0.0 }
  0xba   :  { %388 = vmatpush.msra.mxu1 %v273_v8  ;;  %533 = vmatpush.msra.mxu3 %v273_v8 }
  0xbc   :  { %389 = vmatpush.msra.mxu1 %v272_v13  ;;  %534 = vmatpush.msra.mxu3 %v272_v13  ;;  %v385_v13 = vpop.permute.xlu1 %384 }
  0xbd   :  { %v232_v18 = vpop.f32.mrf.mxu0 }
  0xbe   :  { %390 = vmatpush.msra.mxu1 %v271_v16  ;;  %535 = vmatpush.msra.mxu3 %v271_v16  ;;  %v233_v30 = vadd.f32 %v232_v18, %v100_v22 }
  0xc0   :  { %391 = vmatpush.msra.mxu1 %v270_v19  ;;  %536 = vmatpush.msra.mxu3 %v270_v19  ;;  %v266_v36 = vmax.f32 %v233_v30, 0.0 }
  0xc2   :  { %392 = vmatpush.msra.mxu1 %v269_v20  ;;  %537 = vmatpush.msra.mxu3 %v269_v20 }
  0xc4   :  { %v370_v18 = vpop.permute.xlu1 %369 }
  0xc5   :  { %v235_v23 = vpop.f32.mrf.mxu0 }
  0xc6   :  { %v236_v27 = vadd.f32 %v235_v23, %v105_v21  ;;  %v365_v21 = vpop.permute.xlu2 %364 }
  0xc8   :  { %v267_v34 = vmax.f32 %v236_v27, 0.0 }
  0xcc   :  { %v355_v23 = vpop.permute.xlu1 %354 }
  0xcd   :  { %v238_v26 = vpop.f32.mrf.mxu0 }
  0xce   :  { %v239_v28 = vadd.f32 %v238_v26, %v110_v17  ;;  %v375_v17 = vpop.permute.xlu0 %374  ;;  %v350_v30 = vpop.permute.xlu2 %349 }
  0xd0   :  { %v268_v31 = vmax.f32 %v239_v28, 0.0 }
  0xd2   :  { %393 = vmatpush.msra.mxu1 %v268_v31  ;;  %538 = vmatpush.msra.mxu3 %v268_v31 }
  0xd4   :  { %394 = vmatpush.msra.mxu1 %v267_v34  ;;  %539 = vmatpush.msra.mxu3 %v267_v34 }
  0xd6   :  { %395 = vmatpush.msra.mxu1 %v266_v36  ;;  %540 = vmatpush.msra.mxu3 %v266_v36  ;;  %v360_v22 = vpop.permute.xlu0 %359  ;;  %v340_v36 = vpop.permute.xlu1 %339 }
  0xd8   :  { %396 = vmatpush.msra.mxu1 %v265_v38  ;;  %541 = vmatpush.msra.mxu3 %v265_v38 }
  0xda   :  { %397 = vmatpush.msra.mxu1 %v264_v41  ;;  %542 = vmatpush.msra.mxu3 %v264_v41 }
  0xdc   :  { %398 = vmatpush.msra.mxu1 %v263_v44  ;;  %543 = vmatpush.msra.mxu3 %v263_v44  ;;  %v335_v44 = vpop.permute.xlu2 %334 }
  0xde   :  { %399 = vmatpush.msra.mxu1 %v262_v47  ;;  %544 = vmatpush.msra.mxu3 %v262_v47  ;;  %v345_v33 = vpop.permute.xlu0 %344 }
  0xe0   :  { %400 = vmatpush.msra.mxu1 %v261_v48  ;;  %545 = vmatpush.msra.mxu3 %v261_v48 }
  0xe2   :  { %401 = vmatpush.msra.mxu1 %v260_v50  ;;  %546 = vmatpush.msra.mxu3 %v260_v50  ;;  %v325_v50 = vpop.permute.xlu1 %324 }
  0xe4   :  { %402 = vmatpush.msra.mxu1 %v259_v51  ;;  %547 = vmatpush.msra.mxu3 %v259_v51 }
  0xe5   :  { %403 = vmatmul.f32.vlgmr.msra.gmra.mxu1 %v275_v53  ;;  %427 = vmatmul.f32.vlgmr.msra.gmra.mxu3 %v283_v54 }
  0xe6   :  { %v330_v47 = vpop.permute.xlu0 %329 }
  0xed   :  { %406 = vmatmul.f32.gmra.mxu1 %v276_v52  ;;  %430 = vmatmul.f32.gmra.mxu3 %v284_v55 }
  0xf5   :  { %409 = vmatmul.f32.gmra.mxu1 %v277_v56  ;;  %433 = vmatmul.f32.gmra.mxu3 %v285_v57  ;;  %v320_v57 = vpop.permute.xlu2 %319 }
  0xfd   :  { %412 = vmatmul.f32.gmra.mxu1 %v278_v58  ;;  %436 = vmatmul.f32.gmra.mxu3 %v286_v59 }
 0x105   :  { %415 = vmatmul.f32.gmra.mxu1 %v279_v60  ;;  %439 = vmatmul.f32.gmra.mxu3 %v287_v61  ;;  %v315_v60 = vpop.permute.xlu0 %314 }
 0x10d   :  { %418 = vmatmul.f32.gmra.mxu1 %v280_v62  ;;  %442 = vmatmul.f32.gmra.mxu3 %v288_v63  ;;  %v310_v63 = vpop.permute.xlu1 %309 }
 0x115   :  { %421 = vmatmul.f32.gmra.mxu1 %v281_v0  ;;  %445 = vmatmul.f32.gmra.mxu3 %v289_v1 }
 0x11d   :  { %424 = vmatmul.f32.gmra.mxu1 %v282_v2  ;;  %448 = vmatmul.f32.gmra.mxu3 %v290_v3 }
 0x162   :  { %v849_v4 = vpop.f32.mrf.mxu1 }
 0x163   :  { %v405_v0 = vadd.f32 %v849_v4, %v310_v63 }
 0x165   :  { %v452_v3 = vmax.f32 %v405_v0, 0.0 }
 0x168   :  { %v428_v5 = vpop.f32.mrf.mxu3 }
 0x169   :  { %v429_v42 = vadd.f32 %v428_v5, %v350_v30  ;;  %v468_v5 = vld [vmem:[%s866_s5] sm:$0x1] }
 0x16a   :  { %v851_v6 = vpop.f32.mrf.mxu1 }
 0x16b   :  { %v460_v48 = vmax.f32 %v429_v42, 0.0  ;;  %v408_v61 = vadd.f32 %v851_v6, %v315_v60 }
 0x16d   :  { %v453_v2 = vmax.f32 %v408_v61, 0.0 }
 0x170   :  { %v431_v7 = vpop.f32.mrf.mxu3 }
 0x171   :  { %v432_v39 = vadd.f32 %v431_v7, %v355_v23  ;;  %v473_v7 = vpop.permute.xlu2 %472 }
 0x172   :  { %v410_v9 = vpop.f32.mrf.mxu1  ;;  %v475_v4 = vperm.slane %v473_v7, 0 }
 0x173   :  { %v461_v45 = vmax.f32 %v432_v39, 0.0  ;;  %v411_v58 = vadd.f32 %v410_v9, %v320_v57 }
 0x175   :  { %v454_v1 = vmax.f32 %v411_v58, 0.0 }
 0x178   :  { %v434_v8 = vpop.f32.mrf.mxu3 }
 0x179   :  { %v435_v37 = vadd.f32 %v434_v8, %v360_v22 }
 0x17a   :  { %v413_v11 = vpop.f32.mrf.mxu1 }
 0x17b   :  { %v462_v43 = vmax.f32 %v435_v37, 0.0  ;;  %v414_v55 = vadd.f32 %v413_v11, %v325_v50 }
 0x17d   :  { %v455_v62 = vmax.f32 %v414_v55, 0.0 }
 0x180   :  { %v437_v10 = vpop.f32.mrf.mxu3 }
 0x181   :  { %v438_v34 = vadd.f32 %v437_v10, %v365_v21 }
 0x182   :  { %v416_v14 = vpop.f32.mrf.mxu1 }
 0x183   :  { %v463_v40 = vmax.f32 %v438_v34, 0.0  ;;  %v417_v54 = vadd.f32 %v416_v14, %v330_v47 }
 0x185   :  { %v456_v59 = vmax.f32 %v417_v54, 0.0 }
 0x188   :  { %v440_v12 = vpop.f32.mrf.mxu3 }
 0x189   :  { %v441_v31 = vadd.f32 %v440_v12, %v370_v18 }
 0x18a   :  { %v419_v19 = vpop.f32.mrf.mxu1 }
 0x18b   :  { %v464_v38 = vmax.f32 %v441_v31, 0.0  ;;  %v420_v51 = vadd.f32 %v419_v19, %v335_v44 }
 0x18d   :  { %v457_v56 = vmax.f32 %v420_v51, 0.0 }
 0x190   :  { %v443_v16 = vpop.f32.mrf.mxu3 }
 0x191   :  { %v444_v28 = vadd.f32 %v443_v16, %v375_v17 }
 0x192   :  { %v422_v27 = vpop.f32.mrf.mxu1 }
 0x193   :  { %v465_v35 = vmax.f32 %v444_v28, 0.0  ;;  %v423_v49 = vadd.f32 %v422_v27, %v340_v36 }
 0x195   :  { %v458_v52 = vmax.f32 %v423_v49, 0.0 }
 0x198   :  { %v446_v20 = vpop.f32.mrf.mxu3 }
 0x199   :  { %v447_v25 = vadd.f32 %v446_v20, %v380_v15 }
 0x19a   :  { %v425_v41 = vpop.f32.mrf.mxu1 }
 0x19b   :  { %v466_v32 = vmax.f32 %v447_v25, 0.0  ;;  %v426_v46 = vadd.f32 %v425_v41, %v345_v33 }
 0x19d   :  { %v459_v53 = vmax.f32 %v426_v46, 0.0 }
 0x1a0   :  { %v449_v24 = vpop.f32.mrf.mxu3 }
 0x1a1   :  { %v450_v26 = vadd.f32 %v449_v24, %v385_v13 }
 0x1a3   :  { %v467_v29 = vmax.f32 %v450_v26, 0.0 }
 0x1a5   :  { %476 = vmatpush.msrb.mxu2 %v467_v29 }
 0x1a7   :  { %477 = vmatpush.msrb.mxu2 %v466_v32 }
 0x1a9   :  { %478 = vmatpush.msrb.mxu2 %v465_v35 }
 0x1ab   :  { %479 = vmatpush.msrb.mxu2 %v464_v38 }
 0x1ad   :  { %480 = vmatpush.msrb.mxu2 %v463_v40 }
 0x1af   :  { %481 = vmatpush.msrb.mxu2 %v462_v43 }
 0x1b1   :  { %482 = vmatpush.msrb.mxu2 %v461_v45 }
 0x1b3   :  { %483 = vmatpush.msrb.mxu2 %v460_v48 }
 0x1b5   :  { %484 = vmatpush.msrb.mxu2 %v459_v53 }
 0x1b7   :  { %485 = vmatpush.msrb.mxu2 %v458_v52 }
 0x1b9   :  { %486 = vmatpush.msrb.mxu2 %v457_v56 }
 0x1bb   :  { %487 = vmatpush.msrb.mxu2 %v456_v59 }
 0x1bd   :  { %488 = vmatpush.msrb.mxu2 %v455_v62 }
 0x1bf   :  { %489 = vmatpush.msrb.mxu2 %v454_v1 }
 0x1c1   :  { %490 = vmatpush.msrb.mxu2 %v453_v2 }
 0x1c3   :  { %491 = vmatpush.msrb.mxu2 %v452_v3 }
 0x1c4   :  { %492 = vmatmul.f32.vlgmr.msrb.gmra.mxu2 %v468_v5 }
 0x247   :  { %v493_v6 = vpop.f32.mrf.mxu2 }
 0x248   :  { %v494_v8 = vadd.f32 %v493_v6, %v475_v4 }
 0x24a   :  { %497 = vst.msk [vmem:[#allocation3] sm:$0x1] %vm496_vm1, %v494_v8 }
 0x24b   :  { %508 = dma.vmem_to_hbm [thread:$0]  %s504_s26, 16, %s506_s29, [#allocation4]  }
 0x24c   :  { %577 = dma.done.wait [#allocation4], 16  }
 0x24d   :  { %578 = vsyncadd [#allocation4], 4294967280 }
 0x24e   :  { %513 = vsyncpa [#allocation4], 1 }

</bundles_post_ra>
